<compile_context>
chip_gen: v7x
topology: tpu7x:2x2x1
jax: 0.10.0
libtpu: 0.0.40
codegen_flags: <defaults>
</compile_context>

<pallas_src>
import numpy as np
import jax
import jax.numpy as jnp
from jax.experimental import pallas as pl
from jax.experimental.pallas import tpu as pltpu

# ----------------------------- model config ---------------------------------
IN_CHANNELS = 3          # no surface normals -> single (xyz) branch
OUT_CHANNELS = 5
BAND_WIDTH_IN = 8        # input sphere bandwidth (grid 2b x 2b = 16 x 16)
FEATURE_CHANNELS = (8, 16)
BAND_WIDTH_LIST = (4, 2)
NUM_POINTS = 64
BATCH = 2
BN_EPS = 1e-5

F0, F1 = FEATURE_CHANNELS
A0 = 2 * BAND_WIDTH_IN           # 16 (alpha = beta grid size, stage 0)
A1 = 2 * BAND_WIDTH_LIST[0]      # 8
A2 = 2 * BAND_WIDTH_LIST[1]      # 4
LANES = F0 * A1                  # 64 lanes for every activation slab
assert F1 * A2 == LANES and BATCH * A0 <= LANES and OUT_CHANNELS <= LANES


# ------------------------ packed-slab static layout --------------------------
def _layout(sizes, align):
    offs, off = [], 0
    for n in sizes:
        offs.append(off)
        off += ((n + align - 1) // align) * align
    return offs, off


# bf16 matmul slab: w1 | w2 | wfc(padded) | pb1 | pb2 | q   (16-row aligned)
(W1_OFF, W2_OFF, WFC_OFF, PB1_OFF, PB2_OFF, Q_OFF), W_SLAB_ROWS = _layout(
    [A0, F0 * A1, F1 * A2, BATCH * A1, BATCH * A2, BATCH], 16)
# f32 slab: m1 | m2 | rows(g1, be1, g2, be2, fc_bias)        (8-row aligned)
ROWS_NR = 8
(M1_OFF, M2_OFF, ROWS_OFF), F_SLAB_ROWS = _layout([F0 * A1, F1 * A2, ROWS_NR], 8)


# ----------------------------- fused Pallas kernel ---------------------------
def _s2cnn_fused_kernel(x_ref, wb_ref, fp_ref, o_ref):
    """Entire S2CNN forward on VMEM-resident slabs.

    Activation layout: (rows = batch*beta, lanes = channel*alpha).
      conv (circulant, alpha-pool folded)  : MXU GEMM (bf16 in / f32 acc)
      beta band-limit                      : small left GEMM
      BN (batch stats) + ReLU              : row-reduce (rank-1 GEMMs) then a
                                             tiny lane-averaging GEMM; f32 VPU
      so3_integrate + classifier           : two tiny GEMMs
    """
    f32 = jnp.float32
    bf16 = jnp.bfloat16

    # --- static views into the two packed parameter slabs (one DMA each) -----
    w1 = wb_ref[W1_OFF:W1_OFF + A0, :]                                  # (A0, F0*A1)
    w2 = wb_ref[W2_OFF:W2_OFF + F0 * A1, :]                             # (F0*A1, F1*A2)
    wfc = wb_ref[WFC_OFF:WFC_OFF + F1 * A2, :]                          # (F1*A2, LANES)
    pb1 = wb_ref[PB1_OFF:PB1_OFF + BATCH * A1, :][:, :BATCH * A0]       # (B*A1, B*A0)
    pb2 = wb_ref[PB2_OFF:PB2_OFF + BATCH * A2, :][:, :BATCH * A1]       # (B*A2, B*A1)
    q = wb_ref[Q_OFF:Q_OFF + BATCH, :][:, :BATCH * A2]                  # (B, B*A2)

    m1 = fp_ref[M1_OFF:M1_OFF + F0 * A1, :]                             # (F0*A1, F0*A1)
    m2 = fp_ref[M2_OFF:M2_OFF + F1 * A2, :]                             # (F1*A2, F1*A2)
    rows = fp_ref[ROWS_OFF:ROWS_OFF + ROWS_NR, :]                       # (8, LANES)
    g1, be1, g2, be2, bfc = (rows[0:1], rows[1:2], rows[2:3],
                             rows[3:4], rows[4:5])

    def stage(h_in, w, pb, m, g_row, be_row):
        # circular alpha-correlation + alpha band-limit (folded into w)
        h = jnp.dot(h_in.astype(bf16), w, preferred_element_type=f32)
        # beta band-limit (average pool) as one small left GEMM
        h = jnp.dot(pb, h.astype(bf16), preferred_element_type=f32)
        # BatchNorm3d, training-mode batch statistics.  Conv bias omitted:
        # exactly cancelled by the mean subtraction.  Row-reduce first.
        r = h.shape[0]
        ones_row = jnp.ones((1, r), f32)
        s1 = jnp.dot(ones_row, h, preferred_element_type=f32)           # (1, CA)
        s2 = jnp.dot(ones_row, h * h, preferred_element_type=f32)       # (1, CA)
        mean = jnp.dot(s1, m, preferred_element_type=f32) * (1.0 / r)
        mean_sq = jnp.dot(s2, m, preferred_element_type=f32) * (1.0 / r)
        var = jnp.maximum(mean_sq - mean * mean, 0.0)   # guard f32 cancellation
        h = (h - mean) * jax.lax.rsqrt(var + BN_EPS) * g_row + be_row
        return jnp.maximum(h, 0.0)

    h = stage(x_ref[...], w1, pb1, m1, g1, be1)          # (B*A1, F0*A1)
    h = stage(h, w2, pb2, m2, g2, be2)                   # (B*A2, F1*A2)

    # so3_integrate: quadrature over beta (gamma kept implicit, factor folded)
    feat = jnp.dot(q, h.astype(bf16), preferred_element_type=f32)       # (B, F1*A2)
    # alpha-sum + Linear classifier (folded into wfc; lanes >= OUT are zero)
    logits = jnp.dot(feat.astype(bf16), wfc, preferred_element_type=f32) + bfc
    o_ref[...] = logits[:, :OUT_CHANNELS].astype(o_ref.dtype)


# ----------------------------- glue helpers ----------------------------------
def s3_quadrature_weights(b):
    """SOFT quadrature weights over beta (as in lie_learn S3.quadrature_weights)."""
    k = np.arange(b)
    w = np.array([
        (2.0 / b) * np.sin(np.pi * (2 * j + 1) / (4.0 * b)) *
        np.sum((1.0 / (2 * k + 1)) * np.sin((2 * j + 1) * (2 * k + 1) * np.pi / (4.0 * b)))
        for j in range(2 * b)
    ], dtype=np.float32)
    return jnp.asarray(w)


def pc_project(points, b):
    """PointCloudProjector: bin each point by (beta, alpha), mean radius per cell.

    points: (B, 3, N) -> sphere signal (B, 2b, 2b)   [Ci = 1 kept implicit]
    Implemented with a dense one-hot GEMM (no serialized scatter).
    """
    B, _, N = points.shape
    px, py, pz = points[:, 0], points[:, 1], points[:, 2]
    r = jnp.sqrt(px ** 2 + py ** 2 + pz ** 2) + 1e-8
    beta = jnp.arccos(jnp.clip(pz / r, -1.0, 1.0))            # [0, pi]
    alpha = jnp.arctan2(py, px) + jnp.pi                      # [0, 2pi)
    bi = jnp.clip((beta / jnp.pi * (2 * b)).astype(jnp.int32), 0, 2 * b - 1)
    ai = jnp.clip((alpha / (2 * jnp.pi) * (2 * b)).astype(jnp.int32), 0, 2 * b - 1)
    G = (2 * b) ** 2
    idx = (bi * (2 * b) + ai
           + jnp.arange(B, dtype=jnp.int32)[:, None] * G).reshape(-1)    # (B*N,)
    oh = jax.nn.one_hot(idx, B * G, dtype=jnp.float32)                   # (B*N, B*G)
    stacked = jnp.concatenate(
        [r.reshape(1, -1), jnp.ones((1, B * N), jnp.float32)], axis=0)   # (2, B*N)
    sums = stacked @ oh                                                   # (2, B*G)
    grid = sums[0] / jnp.maximum(sums[1], 1.0)
    return grid.reshape(B, 2 * b, 2 * b)


def _circulant(w):
    """(Co, Ci, A) filters -> (Ci*A_in, Co*A_out) circulant correlation matrix."""
    Co, Ci, A = w.shape
    a = jnp.arange(A)
    idx = (a[:, None] - a[None, :]) % A                  # [a_in, a_out]
    wc = w[:, :, idx]                                    # (Co, Ci, A_in, A_out)
    return jnp.transpose(wc, (1, 2, 0, 3)).reshape(Ci * A, Co * A)


def _avg_pool_mat(n_in, n_out):
    f = n_in // n_out
    return (jnp.arange(n_in)[:, None] // f
            == jnp.arange(n_out)[None, :]).astype(jnp.float32) / f


def _eye(n):
    return jnp.eye(n, dtype=jnp.float32)


# -------------------------- one-time weight folding --------------------------
def init_params(key):
    ks = jax.random.split(key, 3)
    return {
        's2_w': 0.1 * jax.random.normal(ks[0], (F0, 1, A0), jnp.float32),
        's2_b': jnp.zeros((F0,), jnp.float32),
        'bn1_g': jnp.ones((F0,), jnp.float32),
        'bn1_b': jnp.zeros((F0,), jnp.float32),
        'so3_w': 0.1 * jax.random.normal(ks[1], (F1, F0, A1), jnp.float32),
        'so3_b': jnp.zeros((F1,), jnp.float32),
        'bn2_g': jnp.ones((F1,), jnp.float32),
        'bn2_b': jnp.zeros((F1,), jnp.float32),
        'fc_w': 0.1 * jax.random.normal(ks[2], (OUT_CHANNELS, F1), jnp.float32),
        'fc_b': jnp.zeros((OUT_CHANNELS,), jnp.float32),
    }


def prepare_params(params):
    """ONE-TIME fold of all network weights into two packed VMEM slabs.

    Runs once, outside the per-inference path: all circulant / kron /
    avg-pool / quadrature construction lives here, so the jitted forward is
    only {projection GEMM, one pallas_call}.
    """
    f32 = jnp.float32

    # conv -> circulant matrix with the alpha band-limit (avg pool) folded in
    w1 = _circulant(params['s2_w']) @ jnp.kron(_eye(F0), _avg_pool_mat(A0, A1))
    w2 = _circulant(params['so3_w']) @ jnp.kron(_eye(F1), _avg_pool_mat(A1, A2))
    # alpha-sum + Linear classifier folded together, lane-padded to LANES
    wfc = jnp.kron(_eye(F1), jnp.ones((A2, 1), f32)) @ params['fc_w'].T
    wfc = jnp.zeros((F1 * A2, LANES), f32).at[:, :OUT_CHANNELS].set(wfc)
    # beta band-limit (average pool over beta rows, block-diagonal over batch)
    pb1 = jnp.kron(_eye(BATCH), _avg_pool_mat(A0, A1).T)
    pb2 = jnp.kron(_eye(BATCH), _avg_pool_mat(A1, A2).T)
    # so3_integrate: beta quadrature (implicit-gamma factor A2 folded in)
    qw = s3_quadrature_weights(BAND_WIDTH_LIST[1]) * A2
    q = jnp.kron(_eye(BATCH), qw[None, :])

    # NOTE: conv biases (s2_b, so3_b) intentionally dropped here — a per-channel
    # bias followed by batch-statistics BatchNorm is exactly cancelled by the
    # mean subtraction, so the forward output is unchanged.

    def place(slab, mat, row_off):
        return slab.at[row_off:row_off + mat.shape[0], :mat.shape[1]].set(mat)

    wslab = jnp.zeros((W_SLAB_ROWS, LANES), f32)
    for mat, off in ((w1, W1_OFF), (w2, W2_OFF), (wfc, WFC_OFF),
                     (pb1, PB1_OFF), (pb2, PB2_OFF), (q, Q_OFF)):
        wslab = place(wslab, mat, off)
    wslab = wslab.astype(jnp.bfloat16)     # MXU-native inputs; f32 accumulation

    # f32 slab: BN per-channel lane-averaging mats + (gamma, beta, fc-bias) rows
    m1 = jnp.kron(_eye(F0), jnp.ones((A1, A1), f32)) / A1
    m2 = jnp.kron(_eye(F1), jnp.ones((A2, A2), f32)) / A2
    rows = jnp.zeros((ROWS_NR, LANES), f32)
    rows = rows.at[0].set(jnp.repeat(params['bn1_g'], A1))
    rows = rows.at[1].set(jnp.repeat(params['bn1_b'], A1))
    rows = rows.at[2].set(jnp.repeat(params['bn2_g'], A2))
    rows = rows.at[3].set(jnp.repeat(params['bn2_b'], A2))
    rows = rows.at[4, :OUT_CHANNELS].set(params['fc_b'])
    fslab = jnp.zeros((F_SLAB_ROWS, LANES), f32)
    fslab = place(fslab, m1, M1_OFF)
    fslab = place(fslab, m2, M2_OFF)
    fslab = place(fslab, rows, ROWS_OFF)
    return {'wslab': wslab, 'fslab': fslab}


# ----------------------------- full forward ----------------------------------
def s2cnn_forward(points, prepared):
    assert points.shape[0] == BATCH
    # projector: point cloud -> S2 signal laid out as (batch*beta, alpha)
    x = pc_project(points, BAND_WIDTH_IN).reshape(BATCH * A0, A0)
    x = x.astype(jnp.bfloat16)                                     # MXU-native

    wslab, fslab = prepared['wslab'], prepared['fslab']
    logits = pl.pallas_call(
        _s2cnn_fused_kernel,
        out_shape=jax.ShapeDtypeStruct((BATCH, OUT_CHANNELS), jnp.float32),
        grid=(1,),
        in_specs=[pl.BlockSpec(x.shape, lambda i: (0, 0)),
                  pl.BlockSpec(wslab.shape, lambda i: (0, 0)),
                  pl.BlockSpec(fslab.shape, lambda i: (0, 0))],
        out_specs=pl.BlockSpec((BATCH, OUT_CHANNELS), lambda i: (0, 0)),
        compiler_params=pltpu.CompilerParams(
            dimension_semantics=("arbitrary",)),
    )(x, wslab, fslab)
    return {'cls_logits': logits}


if __name__ == "__main__":
    key = jax.random.PRNGKey(0)
    k_pts, k_par = jax.random.split(key)
    points = jax.random.normal(k_pts, (BATCH, IN_CHANNELS, NUM_POINTS), jnp.float32)
    params = init_params(k_par)

    prepared = prepare_params(params)          # one-time weight folding (hoisted)
    fwd = jax.jit(s2cnn_forward)
    out = fwd(points, prepared)
    logits = jax.block_until_ready(out['cls_logits'])
    assert logits.shape == (BATCH, OUT_CHANNELS)
    assert bool(jnp.all(jnp.isfinite(logits)))
    print("KERNEL_OK")
</pallas_src>

<mosaic_0001>
module attributes {stable_mosaic.version = 11 : i64} {
  func.func @_s2cnn_fused_kernel(%arg0: i32, %arg1: memref<32x16xbf16, #tpu.memory_space<vmem>>, %arg2: memref<192x64xbf16, #tpu.memory_space<vmem>>, %arg3: memref<136x64xf32, #tpu.memory_space<vmem>>, %arg4: memref<2x5xf32, #tpu.memory_space<vmem>>) attributes {dimension_semantics = [#tpu.dimension_semantics<arbitrary>], iteration_bounds = array<i64: 1>, scalar_prefetch = 0 : i64, scratch_operands = 0 : i64, tpu.core_type = #tpu.core_type<tc>, window_params = [{pipeline_mode = #tpu.pipeline_mode<synchronous>, transform_indices = @transform_0, window_bounds = array<i64: 32, 16>}, {pipeline_mode = #tpu.pipeline_mode<synchronous>, transform_indices = @transform_1, window_bounds = array<i64: 192, 64>}, {pipeline_mode = #tpu.pipeline_mode<synchronous>, transform_indices = @transform_2, window_bounds = array<i64: 136, 64>}, {pipeline_mode = #tpu.pipeline_mode<synchronous>, transform_indices = @transform_3, window_bounds = array<i64: 2, 5>}]} {
    %c0 = arith.constant 0 : index
    %c0_0 = arith.constant 0 : index
    %0 = vector.load %arg2[%c0, %c0_0] : memref<192x64xbf16, #tpu.memory_space<vmem>>, vector<16x64xbf16>
    %c16 = arith.constant 16 : index
    %c0_1 = arith.constant 0 : index
    %1 = vector.load %arg2[%c16, %c0_1] : memref<192x64xbf16, #tpu.memory_space<vmem>>, vector<64x64xbf16>
    %c80 = arith.constant 80 : index
    %c0_2 = arith.constant 0 : index
    %2 = vector.load %arg2[%c80, %c0_2] : memref<192x64xbf16, #tpu.memory_space<vmem>>, vector<64x64xbf16>
    %c144 = arith.constant 144 : index
    %c0_3 = arith.constant 0 : index
    %3 = vector.load %arg2[%c144, %c0_3] : memref<192x64xbf16, #tpu.memory_space<vmem>>, vector<16x64xbf16>
    %4 = vector.extract_strided_slice %3 {offsets = [0, 0], sizes = [16, 32], strides = [1, 1]} : vector<16x64xbf16> to vector<16x32xbf16>
    %c160 = arith.constant 160 : index
    %c0_4 = arith.constant 0 : index
    %5 = vector.load %arg2[%c160, %c0_4] : memref<192x64xbf16, #tpu.memory_space<vmem>>, vector<8x64xbf16>
    %6 = vector.extract_strided_slice %5 {offsets = [0, 0], sizes = [8, 16], strides = [1, 1]} : vector<8x64xbf16> to vector<8x16xbf16>
    %c176 = arith.constant 176 : index
    %c0_5 = arith.constant 0 : index
    %7 = vector.load %arg2[%c176, %c0_5] : memref<192x64xbf16, #tpu.memory_space<vmem>>, vector<2x64xbf16>
    %8 = vector.extract_strided_slice %7 {offsets = [0, 0], sizes = [2, 8], strides = [1, 1]} : vector<2x64xbf16> to vector<2x8xbf16>
    %c0_6 = arith.constant 0 : index
    %c0_7 = arith.constant 0 : index
    %9 = vector.load %arg3[%c0_6, %c0_7] : memref<136x64xf32, #tpu.memory_space<vmem>>, vector<64x64xf32>
    %c64 = arith.constant 64 : index
    %c0_8 = arith.constant 0 : index
    %10 = vector.load %arg3[%c64, %c0_8] : memref<136x64xf32, #tpu.memory_space<vmem>>, vector<64x64xf32>
    %c128 = arith.constant 128 : index
    %c0_9 = arith.constant 0 : index
    %11 = vector.load %arg3[%c128, %c0_9] : memref<136x64xf32, #tpu.memory_space<vmem>>, vector<8x64xf32>
    %12 = vector.extract_strided_slice %11 {offsets = [0, 0], sizes = [1, 64], strides = [1, 1]} : vector<8x64xf32> to vector<1x64xf32>
    %13 = vector.extract_strided_slice %11 {offsets = [1, 0], sizes = [1, 64], strides = [1, 1]} : vector<8x64xf32> to vector<1x64xf32>
    %14 = vector.extract_strided_slice %11 {offsets = [2, 0], sizes = [1, 64], strides = [1, 1]} : vector<8x64xf32> to vector<1x64xf32>
    %15 = vector.extract_strided_slice %11 {offsets = [3, 0], sizes = [1, 64], strides = [1, 1]} : vector<8x64xf32> to vector<1x64xf32>
    %16 = vector.extract_strided_slice %11 {offsets = [4, 0], sizes = [1, 64], strides = [1, 1]} : vector<8x64xf32> to vector<1x64xf32>
    %c0_10 = arith.constant 0 : index
    %c0_11 = arith.constant 0 : index
    %17 = vector.load %arg1[%c0_10, %c0_11] : memref<32x16xbf16, #tpu.memory_space<vmem>>, vector<32x16xbf16>
    %cst = arith.constant dense<0.000000e+00> : vector<32x64xf32>
    %18 = tpu.matmul %17, %0, %cst {dimension_numbers = #tpu.dot_dimension_numbers<[1], [0], [0], [1], [0, 0, 1, 1], [], []>} : vector<32x16xbf16>, vector<16x64xbf16>, vector<32x64xf32> -> vector<32x64xf32>
    %19 = arith.truncf %18 : vector<32x64xf32> to vector<32x64xbf16>
    %cst_12 = arith.constant dense<0.000000e+00> : vector<16x64xf32>
    %20 = tpu.matmul %4, %19, %cst_12 {dimension_numbers = #tpu.dot_dimension_numbers<[1], [0], [0], [1], [0, 0, 1, 1], [], []>} : vector<16x32xbf16>, vector<32x64xbf16>, vector<16x64xf32> -> vector<16x64xf32>
    %cst_13 = arith.constant 1.000000e+00 : f32
    %21 = vector.broadcast %cst_13 : f32 to vector<1x16xf32>
    %cst_14 = arith.constant dense<0.000000e+00> : vector<1x64xf32>
    %22 = tpu.matmul %21, %20, %cst_14 {dimension_numbers = #tpu.dot_dimension_numbers<[1], [0], [0], [1], [0, 0, 1, 1], [], []>} : vector<1x16xf32>, vector<16x64xf32>, vector<1x64xf32> -> vector<1x64xf32>
    %23 = arith.mulf %20, %20 : vector<16x64xf32>
    %cst_15 = arith.constant dense<0.000000e+00> : vector<1x64xf32>
    %24 = tpu.matmul %21, %23, %cst_15 {dimension_numbers = #tpu.dot_dimension_numbers<[1], [0], [0], [1], [0, 0, 1, 1], [], []>} : vector<1x16xf32>, vector<16x64xf32>, vector<1x64xf32> -> vector<1x64xf32>
    %cst_16 = arith.constant dense<0.000000e+00> : vector<1x64xf32>
    %25 = tpu.matmul %22, %9, %cst_16 {dimension_numbers = #tpu.dot_dimension_numbers<[1], [0], [0], [1], [0, 0, 1, 1], [], []>} : vector<1x64xf32>, vector<64x64xf32>, vector<1x64xf32> -> vector<1x64xf32>
    %cst_17 = arith.constant 6.250000e-02 : f32
    %26 = vector.broadcast %cst_17 : f32 to vector<1x64xf32>
    %27 = arith.mulf %25, %26 : vector<1x64xf32>
    %cst_18 = arith.constant dense<0.000000e+00> : vector<1x64xf32>
    %28 = tpu.matmul %24, %9, %cst_18 {dimension_numbers = #tpu.dot_dimension_numbers<[1], [0], [0], [1], [0, 0, 1, 1], [], []>} : vector<1x64xf32>, vector<64x64xf32>, vector<1x64xf32> -> vector<1x64xf32>
    %cst_19 = arith.constant 6.250000e-02 : f32
    %29 = vector.broadcast %cst_19 : f32 to vector<1x64xf32>
    %30 = arith.mulf %28, %29 : vector<1x64xf32>
    %31 = arith.mulf %27, %27 : vector<1x64xf32>
    %32 = arith.subf %30, %31 : vector<1x64xf32>
    %cst_20 = arith.constant 0.000000e+00 : f32
    %33 = vector.broadcast %cst_20 : f32 to vector<1x64xf32>
    %34 = arith.maximumf %32, %33 : vector<1x64xf32>
    %35 = vector.broadcast %27 : vector<1x64xf32> to vector<16x64xf32>
    %36 = arith.subf %20, %35 : vector<16x64xf32>
    %cst_21 = arith.constant 9.99999974E-6 : f32
    %37 = vector.broadcast %cst_21 : f32 to vector<1x64xf32>
    %38 = arith.addf %34, %37 : vector<1x64xf32>
    %39 = math.rsqrt %38 : vector<1x64xf32>
    %40 = vector.broadcast %39 : vector<1x64xf32> to vector<16x64xf32>
    %41 = arith.mulf %36, %40 : vector<16x64xf32>
    %42 = vector.broadcast %12 : vector<1x64xf32> to vector<16x64xf32>
    %43 = arith.mulf %41, %42 : vector<16x64xf32>
    %44 = vector.broadcast %13 : vector<1x64xf32> to vector<16x64xf32>
    %45 = arith.addf %43, %44 : vector<16x64xf32>
    %cst_22 = arith.constant 0.000000e+00 : f32
    %46 = vector.broadcast %cst_22 : f32 to vector<16x64xf32>
    %47 = arith.maximumf %45, %46 : vector<16x64xf32>
    %48 = arith.truncf %47 : vector<16x64xf32> to vector<16x64xbf16>
    %cst_23 = arith.constant dense<0.000000e+00> : vector<16x64xf32>
    %49 = tpu.matmul %48, %1, %cst_23 {dimension_numbers = #tpu.dot_dimension_numbers<[1], [0], [0], [1], [0, 0, 1, 1], [], []>} : vector<16x64xbf16>, vector<64x64xbf16>, vector<16x64xf32> -> vector<16x64xf32>
    %50 = arith.truncf %49 : vector<16x64xf32> to vector<16x64xbf16>
    %cst_24 = arith.constant dense<0.000000e+00> : vector<8x64xf32>
    %51 = tpu.matmul %6, %50, %cst_24 {dimension_numbers = #tpu.dot_dimension_numbers<[1], [0], [0], [1], [0, 0, 1, 1], [], []>} : vector<8x16xbf16>, vector<16x64xbf16>, vector<8x64xf32> -> vector<8x64xf32>
    %cst_25 = arith.constant 1.000000e+00 : f32
    %52 = vector.broadcast %cst_25 : f32 to vector<1x8xf32>
    %cst_26 = arith.constant dense<0.000000e+00> : vector<1x64xf32>
    %53 = tpu.matmul %52, %51, %cst_26 {dimension_numbers = #tpu.dot_dimension_numbers<[1], [0], [0], [1], [0, 0, 1, 1], [], []>} : vector<1x8xf32>, vector<8x64xf32>, vector<1x64xf32> -> vector<1x64xf32>
    %54 = arith.mulf %51, %51 : vector<8x64xf32>
    %cst_27 = arith.constant dense<0.000000e+00> : vector<1x64xf32>
    %55 = tpu.matmul %52, %54, %cst_27 {dimension_numbers = #tpu.dot_dimension_numbers<[1], [0], [0], [1], [0, 0, 1, 1], [], []>} : vector<1x8xf32>, vector<8x64xf32>, vector<1x64xf32> -> vector<1x64xf32>
    %cst_28 = arith.constant dense<0.000000e+00> : vector<1x64xf32>
    %56 = tpu.matmul %53, %10, %cst_28 {dimension_numbers = #tpu.dot_dimension_numbers<[1], [0], [0], [1], [0, 0, 1, 1], [], []>} : vector<1x64xf32>, vector<64x64xf32>, vector<1x64xf32> -> vector<1x64xf32>
    %cst_29 = arith.constant 1.250000e-01 : f32
    %57 = vector.broadcast %cst_29 : f32 to vector<1x64xf32>
    %58 = arith.mulf %56, %57 : vector<1x64xf32>
    %cst_30 = arith.constant dense<0.000000e+00> : vector<1x64xf32>
    %59 = tpu.matmul %55, %10, %cst_30 {dimension_numbers = #tpu.dot_dimension_numbers<[1], [0], [0], [1], [0, 0, 1, 1], [], []>} : vector<1x64xf32>, vector<64x64xf32>, vector<1x64xf32> -> vector<1x64xf32>
    %cst_31 = arith.constant 1.250000e-01 : f32
    %60 = vector.broadcast %cst_31 : f32 to vector<1x64xf32>
    %61 = arith.mulf %59, %60 : vector<1x64xf32>
    %62 = arith.mulf %58, %58 : vector<1x64xf32>
    %63 = arith.subf %61, %62 : vector<1x64xf32>
    %cst_32 = arith.constant 0.000000e+00 : f32
    %64 = vector.broadcast %cst_32 : f32 to vector<1x64xf32>
    %65 = arith.maximumf %63, %64 : vector<1x64xf32>
    %66 = vector.broadcast %58 : vector<1x64xf32> to vector<8x64xf32>
    %67 = arith.subf %51, %66 : vector<8x64xf32>
    %cst_33 = arith.constant 9.99999974E-6 : f32
    %68 = vector.broadcast %cst_33 : f32 to vector<1x64xf32>
    %69 = arith.addf %65, %68 : vector<1x64xf32>
    %70 = math.rsqrt %69 : vector<1x64xf32>
    %71 = vector.broadcast %70 : vector<1x64xf32> to vector<8x64xf32>
    %72 = arith.mulf %67, %71 : vector<8x64xf32>
    %73 = vector.broadcast %14 : vector<1x64xf32> to vector<8x64xf32>
    %74 = arith.mulf %72, %73 : vector<8x64xf32>
    %75 = vector.broadcast %15 : vector<1x64xf32> to vector<8x64xf32>
    %76 = arith.addf %74, %75 : vector<8x64xf32>
    %cst_34 = arith.constant 0.000000e+00 : f32
    %77 = vector.broadcast %cst_34 : f32 to vector<8x64xf32>
    %78 = arith.maximumf %76, %77 : vector<8x64xf32>
    %79 = arith.truncf %78 : vector<8x64xf32> to vector<8x64xbf16>
    %cst_35 = arith.constant dense<0.000000e+00> : vector<2x64xf32>
    %80 = tpu.matmul %8, %79, %cst_35 {dimension_numbers = #tpu.dot_dimension_numbers<[1], [0], [0], [1], [0, 0, 1, 1], [], []>} : vector<2x8xbf16>, vector<8x64xbf16>, vector<2x64xf32> -> vector<2x64xf32>
    %81 = arith.truncf %80 : vector<2x64xf32> to vector<2x64xbf16>
    %cst_36 = arith.constant dense<0.000000e+00> : vector<2x64xf32>
    %82 = tpu.matmul %81, %2, %cst_36 {dimension_numbers = #tpu.dot_dimension_numbers<[1], [0], [0], [1], [0, 0, 1, 1], [], []>} : vector<2x64xbf16>, vector<64x64xbf16>, vector<2x64xf32> -> vector<2x64xf32>
    %83 = vector.broadcast %16 : vector<1x64xf32> to vector<2x64xf32>
    %84 = arith.addf %82, %83 : vector<2x64xf32>
    %85 = vector.extract_strided_slice %84 {offsets = [0, 0], sizes = [2, 5], strides = [1, 1]} : vector<2x64xf32> to vector<2x5xf32>
    %c0_37 = arith.constant 0 : index
    %c0_38 = arith.constant 0 : index
    %86 = vector.load %arg4[%c0_37, %c0_38] : memref<2x5xf32, #tpu.memory_space<vmem>>, vector<2x5xf32>
    tpu.vector_store %arg4[%c0_37, %c0_38], %85 {strides = array<i32>} : memref<2x5xf32, #tpu.memory_space<vmem>>, vector<2x5xf32>,
    return
  }
  func.func @transform_0(%arg0: i32) -> (i32, i32) {
    %c0_i32 = arith.constant 0 : i32
    %c0_i32_0 = arith.constant 0 : i32
    %c0_i32_1 = arith.constant 0 : i32
    return %c0_i32, %c0_i32_0 : i32, i32
  }
  func.func @transform_1(%arg0: i32) -> (i32, i32) {
    %c0_i32 = arith.constant 0 : i32
    %c0_i32_0 = arith.constant 0 : i32
    %c0_i32_1 = arith.constant 0 : i32
    return %c0_i32, %c0_i32_0 : i32, i32
  }
  func.func @transform_2(%arg0: i32) -> (i32, i32) {
    %c0_i32 = arith.constant 0 : i32
    %c0_i32_0 = arith.constant 0 : i32
    %c0_i32_1 = arith.constant 0 : i32
    return %c0_i32, %c0_i32_0 : i32, i32
  }
  func.func @transform_3(%arg0: i32) -> (i32, i32) {
    %c0_i32 = arith.constant 0 : i32
    %c0_i32_0 = arith.constant 0 : i32
    %c0_i32_1 = arith.constant 0 : i32
    return %c0_i32, %c0_i32_0 : i32, i32
  }
}

</mosaic_0001>

<bundles_post_ra>
// kernel: s2cnn_forward.1
= control target key start
LH: loop header
LB: loop body
LE: loop exit
PB: predicated region body
PF: predicated region fallthrough
CT: control target
= control target key end

     0   :  { %vm75_vm0 = vcmask 130048   ;;  %s1656_s0 = inlined_call_operand.vmem [shape: bf16[32,16], index: 0, kind: input, shape index: {}]   ;;  %s1657_s1 = inlined_call_operand.vmem [shape: bf16[192,64], index: 1, kind: input, shape index: {}]   ;;  %s1658_s2 = inlined_call_operand.vmem [shape: f32[136,64], index: 2, kind: input, shape index: {}]   ;;  %s1659_s3 = inlined_call_operand.hbm [shape: f32[2,5], index: 3, kind: output, shape index: {}]  }
   0x1   :  { %v1377_v0 = vld [vmem:[%s1657_s1] sm:$0xff]   ;;  %v1379_v2 = vld [vmem:[%s1656_s0 + $0x8] sm:$0xff]  }
   0x2   :  { %v1378_v1 = vld [vmem:[%s1656_s0] sm:$0xff]   ;;  %1168 = vmatprep.subr.bf16.mxu0 %v1377_v0 }
   0x3   :  { %1169 = vmatpush3.bf16.msra.mxu0 %v1377_v0  ;;  %1170 = vmatprep.mubr.msk.bf16.mxu0 %vm75_vm0, %v1378_v1 }
   0x6   :  { %1171 = vmatmul.mubr.msk.bf16.vlgmr.msra.gmra.mrb[0].mxu0 %vm75_vm0, %v1379_v2 }
   0x7   :  { %8 = vsyncpa [#allocation3], 0  ;;  %v1417_v3 = vmov 0.0   ;;  %vm1418_vm1 = vmmov 0   ;;  %v1380_v10 = vld [vmem:[%s1657_s1 + $0x48] sm:$0xff]   ;;  %vm138_vm2 = vcmask 261120   ;;  %v480_v41 = vlaneseq }
   0x8   :  { %1174 = vmatprep.subr.bf16.mxu0 %v1417_v3  ;;  %1178 = vmatprep.mubr.msk.bf16.mxu0 %vm1418_vm1, %v1417_v3  ;;  %v1419_v11 = vmov 0.0|0.0   ;;  %v38_v12 = vld [vmem:[%s1658_s2] sm:$0xff]  ;;  %v39_v13 = vld [vmem:[%s1658_s2 + $0x8] sm:$0xff]  ;;  %v40_v14 = vld [vmem:[%s1658_s2 + $0x10] sm:$0xff]  ;;  %v1420_v32 = vmov 1.0   ;;  %vm328_vm3 = vcmask 523264  }
   0x9   :  { %1212 = vmatprep.mubr.msk.f32.mxu1 %vm1418_vm1, %v1417_v3  ;;  %1324 = vmatprep.subr.bf16.mxu1 %v1419_v11  ;;  %v1325_v15 = vpack.c.bf16 %v39_v13, %v38_v12  ;;  %v41_v16 = vld [vmem:[%s1658_s2 + $0x18] sm:$0xff]  ;;  %v42_v18 = vld [vmem:[%s1658_s2 + $0x20] sm:$0xff]  ;;  %v43_v19 = vld [vmem:[%s1658_s2 + $0x28] sm:$0xff]  ;;  %v1540_v42 = vshrl.u32 %v480_v41, 7  ;;  %vm621_vm4 = vcmask 64512   ;;  %vm943_vm5 = vcmask 1043456  }
   0xa   :  { %v1328_v17 = vpack.c.bf16 %v41_v16, %v40_v14  ;;  %v1331_v20 = vpack.c.bf16 %v43_v19, %v42_v18  ;;  %v44_v21 = vld [vmem:[%s1658_s2 + $0x30] sm:$0xff]  ;;  %v45_v22 = vld [vmem:[%s1658_s2 + $0x38] sm:$0xff]  ;;  %v1381_v37 = vld [vmem:[%s1657_s1 + $0x8] sm:$0xff]   ;;  %s1421_s17 = smov [#allocation2]   ;;  %vm1059_vm6 = vcmask 33792  }
   0xb   :  { %1326 = vmatpush3.bf16.msra.mxu1 %v1325_v15  ;;  %v1334_v23 = vpack.c.bf16 %v45_v22, %v44_v21  ;;  %v1382_v38 = vld [vmem:[%s1657_s1 + $0x10] sm:$0xff]   ;;  %v1383_v39 = vld [vmem:[%s1657_s1 + $0x18] sm:$0xff]   ;;  %v1384_v40 = vld [vmem:[%s1657_s1 + $0x20] sm:$0xff]   ;;  %v1543_v43 = vsub.s32 0, %v1540_v42  ;;  %v502_v58 = vsub.s32 1, %v1540_v42  ;;  %s1067_s0 = sshll.u32 %s1421_s17, 4  ;;  %s1068_s0 = int_to_ptr.vmem [resolvable:$true] %s1067_s0 }
   0xc   :  { %1327 = vmatprep.subr.bf16.mxu1 %v1419_v11  ;;  %v1551_v57 = vld [vmem:[%s1658_s2 + $0x80] sm:$0xff]  ;;  %v48_v18 = vld [vmem:[%s1658_s2 + $0x50] sm:$0xff]  ;;  %p1398_p1 = scmp.lt.s32.totalorder %s1068_s0, %s1068_s0 }
   0xd   :  { %v497_v61 = vrot.slane %v1551_v57, %v1543_v43  ;;  %v503_v0 = vrot.slane %v1551_v57, %v502_v58  ;;  %v46_v16 = vld [vmem:[%s1658_s2 + $0x40] sm:$0xff] }
   0xe   :  { %v50_v22 = vld [vmem:[%s1658_s2 + $0x60] sm:$0xff] }
   0xf   :  { %1329 = vmatpush3.bf16.msra.mxu1 %v1328_v17 }
  0x10   :  { %1330 = vmatprep.subr.bf16.mxu1 %v1419_v11 }
  0x13   :  { %1332 = vmatpush3.bf16.msra.mxu1 %v1331_v20 }
  0x14   :  { %1333 = vmatprep.subr.bf16.mxu1 %v1419_v11 }
  0x17   :  { %1335 = vmatpush3.bf16.msra.mxu1 %v1334_v23 }
  0x18   :  { %1234 = vmatprep.subr.bf16.mxu1 %v1417_v3 }
  0xd9   :  { %v1172_v4 = vpop.f32.mrb[0].mxu0 }
  0xda   :  { %v116_v5 = vpop.f32.mrb[1].mxu0 }
  0xdb   :  { %v1173_v6 = vpop.f32.mrb[2].mxu0 }
  0xdc   :  { %v132_v7 = vpack.c.bf16 %v1173_v6, %v1172_v4  ;;  %v119_v8 = vpop.f32.mrb[3].mxu0 }
  0xdd   :  { %v131_v9 = vpack.c.bf16 %v119_v8, %v116_v5 }
  0xdf   :  { %1175 = vmatpush3.bf16.msra.mxu0 %v131_v9 }
  0xe0   :  { %1176 = vmatprep.subr.bf16.mxu0 %v1417_v3 }
  0xe3   :  { %1177 = vmatpush3.bf16.msra.mxu0 %v132_v7 }
  0xe4   :  { %1318 = vmatprep.subr.bf16.mxu0 %v1419_v11 }
  0xe6   :  { %1179 = vmatmul.mubr.msk.bf16.vlgmr.msra.gmra.mrb[4].mxu0 %vm138_vm2, %v1380_v10 }
  0xe7   :  { %1186 = vmatprep.mubr.msk.f32.mxu0 %vm1418_vm1, %v1417_v3 }
 0x1b9   :  { %v1494_v24 = vpop.f32.mrb[4].mxu0 }
 0x1ba   :  { %v1180_v25 = vpop.f32.mrb[5].mxu0  ;;  %v256_v27 = vmul.f32 %v1494_v24, %v1494_v24 }
 0x1bb   :  { %v1496_v26 = vpop.f32.mrb[6].mxu0  ;;  %v52_v25 = vld [vmem:[%s1658_s2 + $0x70] sm:$0xff] }
 0x1bc   :  { %v1319_v28 = vpack.c.bf16 %v1496_v26, %v1494_v24  ;;  %v257_v29 = vmul.f32 %v1496_v26, %v1496_v26  ;;  %v1181_v30 = vpop.f32.mrb[7].mxu0 }
 0x1be   :  { %v1322_v31 = vpack.c.bf16 %v257_v29, %v256_v27  ;;  %1320 = vmatpush3.bf16.msra.mxu0 %v1319_v28 }
 0x1bf   :  { %1321 = vmatprep.subr.bf16.mxu0 %v1419_v11 }
 0x1c1   :  { %1187 = vmatmul.mubr.msk.f32.vlgmr.msra.gmra.mrb[8].mxu0 %vm75_vm0, %v1420_v32 }
 0x1c2   :  { %1323 = vmatpush3.bf16.msra.mxu0 %v1322_v31  ;;  %1193 = vmatprep.mubr.msk.f32.mxu0 %vm1418_vm1, %v1417_v3 }
 0x1c3   :  { %1336 = vmatprep.subr.bf16.mxu0 %v1419_v11 }
 0x1c5   :  { %1194 = vmatmul.mubr.msk.f32.vlgmr.msra.gmra.mrb[10].mxu0 %vm75_vm0, %v1420_v32 }
 0x1c6   :  { %1338 = vmatpush3.bf16.msra.mxu0 %v1325_v15  ;;  %1231 = vmatprep.mubr.msk.f32.mxu0 %vm1418_vm1, %v1417_v3  ;;  %v36_v15 = vld [vmem:[%s1657_s1 + $0x50] sm:$0xf] }
 0x1c7   :  { %1339 = vmatprep.subr.bf16.mxu0 %v1419_v11 }
 0x1ca   :  { %1341 = vmatpush3.bf16.msra.mxu0 %v1328_v17  ;;  %v47_v17 = vld [vmem:[%s1658_s2 + $0x48] sm:$0xff] }
 0x1cb   :  { %1342 = vmatprep.subr.bf16.mxu0 %v1419_v11  ;;  %v1349_v19 = vpack.c.bf16 %v47_v17, %v46_v16 }
 0x1ce   :  { %1344 = vmatpush3.bf16.msra.mxu0 %v1331_v20  ;;  %v49_v20 = vld [vmem:[%s1658_s2 + $0x58] sm:$0xff] }
 0x1cf   :  { %1345 = vmatprep.subr.bf16.mxu0 %v1419_v11  ;;  %v1352_v21 = vpack.c.bf16 %v49_v20, %v48_v18 }
 0x1d2   :  { %1347 = vmatpush3.bf16.msra.mxu0 %v1334_v23  ;;  %v51_v23 = vld [vmem:[%s1658_s2 + $0x68] sm:$0xff] }
 0x1d3   :  { %1246 = vmatprep.subr.bf16.mxu0 %v1417_v3 }
 0x294   :  { %v252_v33 = vpop.f32.mrb[8].mxu0 }
 0x295   :  { %v1188_v34 = vpop.f32.mrb[9].mxu0  ;;  %1213 = vmatmul.mubr.msk.f32.vlgmr.msra.gmra.mrb[0].mxu1 %vm328_vm3, %v252_v33 }
 0x296   :  { %1242 = vmatprep.mubr.msk.bf16.mxu1 %vm1418_vm1, %v1417_v3  ;;  %1235 = vmatpush3.bf16.msra.mxu1 %v1381_v37 }
 0x297   :  { %1236 = vmatprep.subr.bf16.mxu1 %v1417_v3 }
 0x298   :  { %v324_v35 = vpop.f32.mrb[10].mxu0 }
 0x299   :  { %v1195_v36 = vpop.f32.mrb[11].mxu0  ;;  %1232 = vmatmul.mubr.msk.f32.vlgmr.msra.gmra.mrb[12].mxu0 %vm328_vm3, %v324_v35 }
 0x29a   :  { %1248 = vmatprep.mubr.msk.bf16.mxu0 %vm1418_vm1, %v1417_v3  ;;  %1237 = vmatpush3.bf16.msra.mxu1 %v1382_v38 }
 0x29b   :  { %1238 = vmatprep.subr.bf16.mxu1 %v1417_v3 }
 0x29e   :  { %1239 = vmatpush3.bf16.msra.mxu1 %v1383_v39 }
 0x29f   :  { %1240 = vmatprep.subr.bf16.mxu1 %v1417_v3 }
 0x2a2   :  { %1241 = vmatpush3.bf16.msra.mxu1 %v1384_v40 }
 0x2a3   :  { %1348 = vmatprep.subr.bf16.mxu1 %v1419_v11 }
 0x368   :  { %v398_v44 = vpop.f32.mrb[0].mxu1 }
 0x369   :  { %v402_v45 = vmul.f32 0.0625, %v398_v44  ;;  %v1214_v46 = vpop.f32.mrb[1].mxu1 }
 0x36b   :  { %v483_v47 = vrot.slane %v402_v45, %v1543_v43  ;;  %v477_v49 = vmul.f32 %v402_v45, %v402_v45 }
 0x36c   :  { %v472_v48 = vpop.f32.mrb[12].mxu0 }
 0x36d   :  { %v484_v50 = vsub.f32 %v1494_v24, %v483_v47  ;;  %v485_v51 = vsub.f32 %v1496_v26, %v483_v47  ;;  %v476_v52 = vmul.f32 0.0625, %v472_v48  ;;  %v1233_v53 = vpop.f32.mrb[13].mxu0  ;;  %v1355_v24 = vpack.c.bf16 %v51_v23, %v50_v22  ;;  %v53_v26 = vld [vmem:[%s1658_s2 + $0x78] sm:$0xff] }
 0x36e   :  { %v1358_v27 = vpack.c.bf16 %v53_v26, %v52_v25 }
 0x36f   :  { %v478_v54 = vsub.f32 %v476_v52, %v477_v49 }
 0x371   :  { %v479_v55 = vmax.f32 %v478_v54, 0.0 }
 0x373   :  { %v486_v56 = vadd.f32 1e-05, %v479_v55 }
 0x375   :  { %1389 = vrsqrt.f32 %v486_v56 }
 0x37f   :  { %v1390_v59 = vpop.eup %1389 }
 0x380   :  { %v491_v60 = vrot.slane %v1390_v59, %v1543_v43 }
 0x382   :  { %v492_v62 = vmul.f32 %v491_v60, %v484_v50  ;;  %v493_v63 = vmul.f32 %v491_v60, %v485_v51  ;;  %v930_v50 = vsub.s32 2, %v1540_v42  ;;  %v935_v51 = vsub.s32 3, %v1540_v42 }
 0x384   :  { %v498_v1 = vmul.f32 %v497_v61, %v492_v62  ;;  %v499_v2 = vmul.f32 %v497_v61, %v493_v63  ;;  %v931_v54 = vrot.slane %v1551_v57, %v930_v50  ;;  %v936_v56 = vrot.slane %v1551_v57, %v935_v51  ;;  %v37_v63 = vld [vmem:[%s1657_s1 + $0x58] sm:$0x1] }
 0x386   :  { %v504_v4 = vadd.f32 %v503_v0, %v498_v1  ;;  %v505_v5 = vadd.f32 %v503_v0, %v499_v2  ;;  %v1386_v0 = vld [vmem:[%s1657_s1 + $0x30] sm:$0xff]   ;;  %v1387_v1 = vld [vmem:[%s1657_s1 + $0x38] sm:$0xff]   ;;  %v1388_v2 = vld [vmem:[%s1657_s1 + $0x40] sm:$0xff]  }
 0x388   :  { %v506_v6 = vmax.f32 %v504_v4, 0.0  ;;  %v507_v7 = vmax.f32 %v505_v5, 0.0 }
 0x38a   :  { %v508_v8 = vpack.c.bf16 %v507_v7, %v506_v6 }
 0x38c   :  { %1243 = vmatmul.mubr.msk.bf16.vlgmr.msra.gmra.mrb[4].mxu1 %vm328_vm3, %v508_v8 }
 0x38d   :  { %1278 = vmatprep.mubr.msk.f32.mxu1 %vm1418_vm1, %v1417_v3  ;;  %1350 = vmatpush3.bf16.msra.mxu1 %v1349_v19 }
 0x38e   :  { %1351 = vmatprep.subr.bf16.mxu1 %v1419_v11 }
 0x391   :  { %1353 = vmatpush3.bf16.msra.mxu1 %v1352_v21 }
 0x392   :  { %1354 = vmatprep.subr.bf16.mxu1 %v1419_v11 }
 0x395   :  { %1356 = vmatpush3.bf16.msra.mxu1 %v1355_v24 }
 0x396   :  { %1357 = vmatprep.subr.bf16.mxu1 %v1419_v11 }
 0x399   :  { %1359 = vmatpush3.bf16.msra.mxu1 %v1358_v27 }
 0x39a   :  { %1300 = vmatprep.subr.bf16.mxu1 %v1417_v3 }
 0x45f   :  { %v570_v9 = vpop.f32.mrb[4].mxu1 }
 0x460   :  { %v1244_v10 = vpop.f32.mrb[5].mxu1 }
 0x461   :  { %v573_v12 = vpop.f32.mrb[6].mxu1 }
 0x462   :  { %v577_v13 = vpack.c.bf16 %v573_v12, %v570_v9  ;;  %v1245_v14 = vpop.f32.mrb[7].mxu1  ;;  %v990_v9 = vsub.s32 4, %v1540_v42 }
 0x464   :  { %1247 = vmatpush3.bf16.msra.mxu0 %v577_v13  ;;  %v991_v10 = vrot.slane %v1551_v57, %v990_v9 }
 0x465   :  { %1252 = vmatprep.subr.mxu0 %v1417_v3 }
 0x467   :  { %1249 = vmatmul.mubr.msk.bf16.vlgmr.msra.gmra.mrb[16].mxu0 %vm75_vm0, %v36_v15 }
 0x468   :  { %1254 = vmatprep.mubr.msk.f32.mxu0 %vm1418_vm1, %v1417_v3 }
 0x53a   :  { %v615_v28 = vpop.f32.mrb[16].mxu0 }
 0x53b   :  { %v694_v29 = vmul.f32 %v615_v28, %v615_v28  ;;  %v1250_v30 = vpop.f32.mrb[17].mxu0  ;;  %1253 = vmatpush3.msra.mxu0 %v615_v28 }
 0x53c   :  { %v618_v31 = vpop.f32.mrb[18].mxu0  ;;  %1255 = vmatmul.mubr.msk.f32.vlgmr.msra.gmra.mrb[14].mxu0 %vm621_vm4, %v1420_v32  ;;  %1257 = vmatprep.subr.mxu0 %v1417_v3 }
 0x53d   :  { %v1251_v33 = vpop.f32.mrb[19].mxu0  ;;  %1258 = vmatpush3.msra.mxu0 %v694_v29  ;;  %1259 = vmatprep.mubr.msk.f32.mxu0 %vm1418_vm1, %v1417_v3 }
 0x53e   :  { %1360 = vmatprep.subr.bf16.mxu0 %v1419_v11 }
 0x540   :  { %1260 = vmatmul.mubr.msk.f32.vlgmr.msra.gmra.mrb[20].mxu0 %vm621_vm4, %v1420_v32 }
 0x541   :  { %1362 = vmatpush3.bf16.msra.mxu0 %v1349_v19  ;;  %1297 = vmatprep.mubr.msk.f32.mxu0 %vm1418_vm1, %v1417_v3 }
 0x542   :  { %1363 = vmatprep.subr.bf16.mxu0 %v1419_v11 }
 0x545   :  { %1365 = vmatpush3.bf16.msra.mxu0 %v1352_v21 }
 0x546   :  { %1366 = vmatprep.subr.bf16.mxu0 %v1419_v11 }
 0x549   :  { %1368 = vmatpush3.bf16.msra.mxu0 %v1355_v24 }
 0x54a   :  { %1369 = vmatprep.subr.bf16.mxu0 %v1419_v11 }
 0x54d   :  { %1371 = vmatpush3.bf16.msra.mxu0 %v1358_v27 }
 0x60f   :  { %v690_v34 = vpop.f32.mrb[14].mxu0 }
 0x610   :  { %1279 = vmatmul.mubr.msk.f32.vlgmr.msra.gmra.mrb[2].mxu1 %vm328_vm3, %v690_v34  ;;  %v1256_v35 = vpop.f32.mrb[15].mxu0 }
 0x611   :  { %1302 = vmatprep.mubr.msk.bf16.mxu1 %vm1418_vm1, %v1417_v3 }
 0x613   :  { %v761_v32 = vpop.f32.mrb[20].mxu0 }
 0x614   :  { %1298 = vmatmul.mubr.msk.f32.vlgmr.msra.gmra.mrb[22].mxu0 %vm328_vm3, %v761_v32  ;;  %v1261_v36 = vpop.f32.mrb[21].mxu0 }
 0x6e3   :  { %v834_v37 = vpop.f32.mrb[2].mxu1 }
 0x6e4   :  { %v838_v38 = vmul.f32 0.125, %v834_v37  ;;  %v1280_v39 = vpop.f32.mrb[3].mxu1 }
 0x6e6   :  { %v919_v40 = vrot.slane %v838_v38, %v1543_v43  ;;  %v913_v44 = vmul.f32 %v838_v38, %v838_v38 }
 0x6e7   :  { %v908_v41 = vpop.f32.mrb[22].mxu0 }
 0x6e8   :  { %v920_v11 = vsub.f32 %v615_v28, %v919_v40  ;;  %v912_v45 = vmul.f32 0.125, %v908_v41  ;;  %v1299_v46 = vpop.f32.mrb[23].mxu0 }
 0x6ea   :  { %v914_v47 = vsub.f32 %v912_v45, %v913_v44 }
 0x6ec   :  { %v915_v48 = vmax.f32 %v914_v47, 0.0 }
 0x6ee   :  { %v921_v49 = vadd.f32 1e-05, %v915_v48 }
 0x6f0   :  { %1391 = vrsqrt.f32 %v921_v49 }
 0x6fa   :  { %v1392_v52 = vpop.eup %1391 }
 0x6fb   :  { %v926_v53 = vrot.slane %v1392_v52, %v1543_v43  ;;  %v1385_v43 = vld [vmem:[%s1657_s1 + $0x28] sm:$0xff]   ;;  %s1393_s1 = scalar_lea.vmem %s1068_s0, 32 }
 0x6fc   :  { %p1394_p0 = scmp.ne.s32.totalorder %s1068_s0, %s1393_s1  ;;  %p1399_p2 = scmp.lt.s32.totalorder %s1393_s1, %s1393_s1 }
 0x6fd   :  { %v927_v55 = vmul.f32 %v926_v53, %v920_v11 }
 0x6fe   :  { %p1400_p3 = por %p1399_p2, %p1398_p1 }
 0x6ff   :  { %v932_v58 = vmul.f32 %v931_v54, %v927_v55 }
 0x700   :  { %p1401_p4 = pnand %p1400_p3, %p1394_p0 }
 0x701   :  { %v937_v59 = vadd.f32 %v936_v56, %v932_v58 }
 0x703   :  { %v938_v60 = vmax.f32 %v937_v59, 0.0 }
 0x705   :  { %v939_v61 = vpack.c.bf16 %v938_v60, %v938_v60 }
 0x707   :  { %v945_v62 = vsel %vm943_vm5, %v939_v61, 0 }
 0x708   :  { %1301 = vmatpush3.bf16.msra.mxu1 %v945_v62 }
 0x709   :  { %1306 = vmatprep.subr.bf16.mxu1 %v1417_v3 }
 0x70b   :  { %1303 = vmatmul.mubr.msk.bf16.vlgmr.msra.gmra.mrb[8].mxu1 %vm621_vm4, %v37_v63 }
 0x70c   :  { %1307 = vmatpush3.bf16.msra.mxu1 %v1385_v43  ;;  %1314 = vmatprep.mubr.msk.bf16.mxu1 %vm1418_vm1, %v1417_v3 }
 0x70d   :  { %1308 = vmatprep.subr.bf16.mxu1 %v1417_v3 }
 0x710   :  { %1309 = vmatpush3.bf16.msra.mxu1 %v1386_v0 }
 0x711   :  { %1310 = vmatprep.subr.bf16.mxu1 %v1417_v3 }
 0x714   :  { %1311 = vmatpush3.bf16.msra.mxu1 %v1387_v1 }
 0x715   :  { %1312 = vmatprep.subr.bf16.mxu1 %v1417_v3 }
 0x718   :  { %1313 = vmatpush3.bf16.msra.mxu1 %v1388_v2 }
 0x7de   :  { %v981_v4 = vpop.f32.mrb[8].mxu1 }
 0x7df   :  { %v987_v5 = vpack.c.bf16 %v981_v4, %v981_v4  ;;  %v1304_v6 = vpop.f32.mrb[9].mxu1 }
 0x7e0   :  { %v984_v7 = vpop.f32.mrb[10].mxu1 }
 0x7e1   :  { %v1305_v8 = vpop.f32.mrb[11].mxu1  ;;  %1315 = vmatmul.mubr.msk.bf16.vlgmr.msra.gmra.mrb[12].mxu1 %vm328_vm3, %v987_v5 }
 0x8b4   :  { %v1053_v12 = vpop.f32.mrb[12].mxu1 }
 0x8b5   :  { %v1054_v3 = vadd.f32 %v1053_v12, %v991_v10  ;;  %v1316_v13 = vpop.f32.mrb[13].mxu1 }
 0x8b6   :  { %v1056_v14 = vpop.f32.mrb[14].mxu1 }
 0x8b7   :  { %v1317_v15 = vpop.f32.mrb[15].mxu1  ;;  %1060 = vst.msk [vmem:[#allocation2] sm:$0x3] %vm1059_vm6, %v1054_v3 }
 0x8b8   :  { %1404 = shalt.err (!%p1401_p4)
}
 0x8b9   :  { %s1405_s20 = scalar_lea.hbm %s1659_s3, 32 }
 0x8ba   :  { %p1406_p5 = scmp.ne.s32.totalorder %s1659_s3, %s1405_s20  ;;  %p1409_p6 = scmp.lt.u32.totalorder %s1405_s20, %s1659_s3 }
 0x8bc   :  { %p1411_p7 = pnand %p1409_p6, %p1406_p5 }
 0x8be   :  { %1414 = shalt.err (!%p1411_p7)
}
 0x8bf   :  { %1070 = dma.vmem_to_hbm [thread:$0]  %s1068_s0, 32, %s1659_s3, [#allocation3]  }
 0x8c0   :  { %1415 = dma.done.wait [#allocation3], 32  }
 0x8c1   :  { %1416 = vsyncadd [#allocation3], 4294967264 }
 0x8c2   :  { %1074 = vsyncpa [#allocation3], 1 }

</bundles_post_ra>
